<compile_context>
chip_gen: v7x
topology: tpu7x:2x2x1
jax: 0.10.0
libtpu: 0.0.40
codegen_flags: <defaults>
</compile_context>

<pallas_src>
import jax
import jax.numpy as jnp
from jax.experimental import pallas as pl
from jax.experimental.pallas import tpu as pltpu


def _make_pointnet_kernel(compute_dtype):
    """Builds the per-(batch, point-tile) kernel body."""

    def kernel(x_ref,               # (1, TN, C)   input points (channels-last)
               w1_ref, b1_ref,      # (C, 64), (1, 64)
               w2_ref, b2_ref,      # (64, 128), (1, 128)
               w3_ref, b3_ref,      # (128, 512), (1, 512)
               pooled_ref,          # (1, 1, 512)  per-batch pooled output
               acc_ref):            # (1, 512)     f32 VMEM accumulator
        n_idx = pl.program_id(1)

        @pl.when(n_idx == 0)
        def _():
            acc_ref[...] = jnp.zeros_like(acc_ref)

        x = x_ref[0].astype(compute_dtype)                          # (TN, C)

        # conv1 (k=1) + relu : (TN, C) @ (C, 64)
        h = jnp.dot(x, w1_ref[...], preferred_element_type=jnp.float32)
        h = jnp.maximum(h + b1_ref[...], 0.0)

        # conv2 (k=1) + relu : (TN, 64) @ (64, 128)
        h = jnp.dot(h.astype(compute_dtype), w2_ref[...],
                    preferred_element_type=jnp.float32)
        h = jnp.maximum(h + b2_ref[...], 0.0)

        # conv3 (k=1) + relu : (TN, 128) @ (128, 512)
        h = jnp.dot(h.astype(compute_dtype), w3_ref[...],
                    preferred_element_type=jnp.float32)
        h = jnp.maximum(h + b3_ref[...], 0.0)

        # per-tile sum over the points (sublane reduce -> XLU, essentially free)
        acc_ref[...] += jnp.sum(h, axis=0, keepdims=True)           # (1, 512) f32

        @pl.when(n_idx == pl.num_programs(1) - 1)
        def _():
            pooled_ref[0] = acc_ref[...].astype(pooled_ref.dtype)

    return kernel


def _pick_n_tile(n, max_tile=1024):
    """Largest point-tile that divides N, is a multiple of 8, and is <= max_tile."""
    if n <= max_tile:
        return n
    for t in range(max_tile, 7, -1):
        if n % t == 0 and t % 8 == 0:
            return t
    # no suitable divisor (e.g. prime N): fall back to the full extent
    return n


def ada_fil2_pointnet_forward(x_ncl, params, *, tn=None,
                              compute_dtype=jnp.float32):
    """x_ncl: (B, C, N) float32 (PyTorch NCL layout). Returns (B, 4) float32."""
    B, C, N = x_ncl.shape
    (w1, b1, w2, b2, w3, b3, wf1, bf1, wf2, bf2) = params

    if tn is None:
        tn = _pick_n_tile(N)
    assert N % tn == 0, (N, tn)
    n_tiles = N // tn

    # channels-last so every conv1d(k=1) is a plain (TN, Cin) @ (Cin, Cout) matmul
    x_bnc = jnp.transpose(x_ncl, (0, 2, 1))                          # (B, N, C)

    cd = compute_dtype
    x_in = x_bnc.astype(cd)
    w1c, w2c, w3c = w1.astype(cd), w2.astype(cd), w3.astype(cd)

    kernel = _make_pointnet_kernel(cd)

    flops = 2 * B * N * (C * 64 + 64 * 128 + 128 * 512)
    bytes_accessed = (
        x_in.size * x_in.dtype.itemsize
        + sum(int(a.size) * a.dtype.itemsize
              for a in (w1c, b1, w2c, b2, w3c, b3))
        + B * 512 * 4)

    grid_spec = pltpu.PrefetchScalarGridSpec(
        num_scalar_prefetch=0,
        grid=(B, n_tiles),
        in_specs=[
            pl.BlockSpec((1, tn, C), lambda b, n: (b, n, 0)),        # x tile
            pl.BlockSpec(w1c.shape, lambda b, n: (0, 0)),            # conv1 W
            pl.BlockSpec(b1.shape,  lambda b, n: (0, 0)),            # conv1 b
            pl.BlockSpec(w2c.shape, lambda b, n: (0, 0)),            # conv2 W
            pl.BlockSpec(b2.shape,  lambda b, n: (0, 0)),            # conv2 b
            pl.BlockSpec(w3c.shape, lambda b, n: (0, 0)),            # conv3 W
            pl.BlockSpec(b3.shape,  lambda b, n: (0, 0)),            # conv3 b
        ],
        # same output block across the N axis => resident accumulator target
        out_specs=pl.BlockSpec((1, 1, 512), lambda b, n: (b, 0, 0)),
        scratch_shapes=[pltpu.VMEM((1, 512), jnp.float32)],
    )

    pooled3 = pl.pallas_call(
        kernel,
        out_shape=jax.ShapeDtypeStruct((B, 1, 512), jnp.float32),
        grid_spec=grid_spec,
        compiler_params=pltpu.CompilerParams(
            dimension_semantics=("parallel", "arbitrary"),
        ),
        cost_estimate=pl.CostEstimate(
            flops=flops, transcendentals=0, bytes_accessed=bytes_accessed),
    )(x_in, w1c, b1, w2c, b2, w3c, b3)

    pooled = pooled3.reshape(B, 512)

    # fc1/fc2 are tiny (M=B, widths 256 / 4): hoisted out of the kernel, plain XLA.
    y = pooled @ wf1 + bf1                                           # (B, 256)
    y = y @ wf2 + bf2                                                # (B, 4)
    return y


def init_params(key, channel):
    """Deterministic parameter init, matching PyTorch layer shapes.

    Stored transposed (in_dim, out_dim) for channels-last matmuls; biases as
    (1, out_dim) rows.
    """
    ks = jax.random.split(key, 10)

    def lin(kw, kb, fan_in, fan_out):
        bound = 1.0 / jnp.sqrt(fan_in)
        w = jax.random.uniform(kw, (fan_in, fan_out), jnp.float32, -bound, bound)
        b = jax.random.uniform(kb, (1, fan_out), jnp.float32, -bound, bound)
        return w, b

    w1, b1 = lin(ks[0], ks[1], channel, 64)     # conv1: Conv1d(channel, 64, 1)
    w2, b2 = lin(ks[2], ks[3], 64, 128)         # conv2: Conv1d(64, 128, 1)
    w3, b3 = lin(ks[4], ks[5], 128, 512)        # conv3: Conv1d(128, 512, 1)
    wf1, bf1 = lin(ks[6], ks[7], 512, 256)      # fc1: Linear(512, 256)
    wf2, bf2 = lin(ks[8], ks[9], 256, 4)        # fc2: Linear(256, 4)
    return (w1, b1, w2, b2, w3, b3, wf1, bf1, wf2, bf2)


def reference_forward(x_ncl, params):
    """Plain-JAX reference matching the PyTorch semantics."""
    (w1, b1, w2, b2, w3, b3, wf1, bf1, wf2, bf2) = params
    x = jnp.transpose(x_ncl, (0, 2, 1))                  # (B, N, C)
    h = jax.nn.relu(x @ w1 + b1)                         # (B, N, 64)
    h = jax.nn.relu(h @ w2 + b2)                         # (B, N, 128)
    h = jax.nn.relu(h @ w3 + b3)                         # (B, N, 512)
    p = jnp.sum(h, axis=1)                               # (B, 512)
    y = p @ wf1 + bf1                                    # (B, 256)
    y = y @ wf2 + bf2                                    # (B, 4)
    return y


if __name__ == "__main__":
    key = jax.random.PRNGKey(0)
    k_x, k_p = jax.random.split(key)

    B, C, N = 2, 4, 16                       # small shapes: batch=2, channel=4, 16 points
    x = jax.random.normal(k_x, (B, C, N), dtype=jnp.float32)   # PyTorch NCL input
    params = init_params(k_p, C)

    ref = reference_forward(x, params)

    # f32 path, tn=8 so the point axis is actually tiled (2 accumulation steps).
    out = ada_fil2_pointnet_forward(x, params, tn=8, compute_dtype=jnp.float32)
    out = jax.block_until_ready(out)
    assert out.shape == (B, 4)
    assert jnp.allclose(out, ref, atol=1e-4, rtol=1e-4), (out, ref)

    # bf16 conv path (f32 accumulation / pooling / FC) — loose tolerance.
    out_bf16 = ada_fil2_pointnet_forward(x, params, tn=8,
                                         compute_dtype=jnp.bfloat16)
    out_bf16 = jax.block_until_ready(out_bf16)
    assert out_bf16.shape == (B, 4)
    assert bool(jnp.all(jnp.isfinite(out_bf16)))
    assert jnp.allclose(out_bf16, ref, rtol=5e-2, atol=2.0), (out_bf16, ref)

    print("KERNEL_OK")
</pallas_src>

<mosaic_0001>
module attributes {stable_mosaic.version = 11 : i64} {
  func.func @kernel(%arg0: i32, %arg1: i32, %arg2: memref<1x8x4xf32, #tpu.memory_space<vmem>>, %arg3: memref<4x64xf32, #tpu.memory_space<vmem>>, %arg4: memref<1x64xf32, #tpu.memory_space<vmem>>, %arg5: memref<64x128xf32, #tpu.memory_space<vmem>>, %arg6: memref<1x128xf32, #tpu.memory_space<vmem>>, %arg7: memref<128x512xf32, #tpu.memory_space<vmem>>, %arg8: memref<1x512xf32, #tpu.memory_space<vmem>>, %arg9: memref<1x1x512xf32, #tpu.memory_space<vmem>>, %arg10: memref<1x512xf32, #tpu.memory_space<vmem>>) attributes {dimension_semantics = [#tpu.dimension_semantics<parallel>, #tpu.dimension_semantics<arbitrary>], iteration_bounds = array<i64: 2, 2>, scalar_prefetch = 0 : i64, scratch_operands = 1 : i64, tpu.core_type = #tpu.core_type<tc>, window_params = [{transform_indices = @transform_0, window_bounds = array<i64: 1, 8, 4>}, {pipeline_mode = #tpu.pipeline_mode<synchronous>, transform_indices = @transform_1, window_bounds = array<i64: 4, 64>}, {pipeline_mode = #tpu.pipeline_mode<synchronous>, transform_indices = @transform_2, window_bounds = array<i64: 1, 64>}, {pipeline_mode = #tpu.pipeline_mode<synchronous>, transform_indices = @transform_3, window_bounds = array<i64: 64, 128>}, {pipeline_mode = #tpu.pipeline_mode<synchronous>, transform_indices = @transform_4, window_bounds = array<i64: 1, 128>}, {pipeline_mode = #tpu.pipeline_mode<synchronous>, transform_indices = @transform_5, window_bounds = array<i64: 128, 512>}, {pipeline_mode = #tpu.pipeline_mode<synchronous>, transform_indices = @transform_6, window_bounds = array<i64: 1, 512>}, {transform_indices = @transform_7, window_bounds = array<i64: 1, 1, 512>}]} {
    %c0_i32 = arith.constant 0 : i32
    %0 = arith.cmpi eq, %arg1, %c0_i32 : i32
    %1 = arith.extui %0 : i1 to i32
    %c0_i32_0 = arith.constant 0 : i32
    %2 = arith.cmpi ne, %1, %c0_i32_0 : i32
    scf.if %2 {
      %cst_26 = arith.constant 0.000000e+00 : f32
      %34 = vector.broadcast %cst_26 : f32 to vector<1x512xf32>
      %c0_27 = arith.constant 0 : index
      %c0_28 = arith.constant 0 : index
      %35 = vector.load %arg10[%c0_27, %c0_28] : memref<1x512xf32, #tpu.memory_space<vmem>>, vector<1x512xf32>
      tpu.vector_store %arg10[%c0_27, %c0_28], %34 {strides = array<i32>} : memref<1x512xf32, #tpu.memory_space<vmem>>, vector<1x512xf32>,
    } else {
    }
    %c0 = arith.constant 0 : index
    %c0_1 = arith.constant 0 : index
    %c0_2 = arith.constant 0 : index
    %3 = vector.load %arg2[%c0, %c0_1, %c0_2] : memref<1x8x4xf32, #tpu.memory_space<vmem>>, vector<1x8x4xf32>
    %4 = vector.shape_cast %3 : vector<1x8x4xf32> to vector<8x4xf32>
    %c0_3 = arith.constant 0 : index
    %c0_4 = arith.constant 0 : index
    %5 = vector.load %arg3[%c0_3, %c0_4] : memref<4x64xf32, #tpu.memory_space<vmem>>, vector<4x64xf32>
    %cst = arith.constant dense<0.000000e+00> : vector<8x64xf32>
    %6 = tpu.matmul %4, %5, %cst {dimension_numbers = #tpu.dot_dimension_numbers<[1], [0], [0], [1], [0, 0, 1, 1], [], []>} : vector<8x4xf32>, vector<4x64xf32>, vector<8x64xf32> -> vector<8x64xf32>
    %c0_5 = arith.constant 0 : index
    %c0_6 = arith.constant 0 : index
    %7 = vector.load %arg4[%c0_5, %c0_6] : memref<1x64xf32, #tpu.memory_space<vmem>>, vector<1x64xf32>
    %8 = vector.broadcast %7 : vector<1x64xf32> to vector<8x64xf32>
    %9 = arith.addf %6, %8 : vector<8x64xf32>
    %cst_7 = arith.constant 0.000000e+00 : f32
    %10 = vector.broadcast %cst_7 : f32 to vector<8x64xf32>
    %11 = arith.maximumf %9, %10 : vector<8x64xf32>
    %c0_8 = arith.constant 0 : index
    %c0_9 = arith.constant 0 : index
    %12 = vector.load %arg5[%c0_8, %c0_9] : memref<64x128xf32, #tpu.memory_space<vmem>>, vector<64x128xf32>
    %cst_10 = arith.constant dense<0.000000e+00> : vector<8x128xf32>
    %13 = tpu.matmul %11, %12, %cst_10 {dimension_numbers = #tpu.dot_dimension_numbers<[1], [0], [0], [1], [0, 0, 1, 1], [], []>} : vector<8x64xf32>, vector<64x128xf32>, vector<8x128xf32> -> vector<8x128xf32>
    %c0_11 = arith.constant 0 : index
    %c0_12 = arith.constant 0 : index
    %14 = vector.load %arg6[%c0_11, %c0_12] : memref<1x128xf32, #tpu.memory_space<vmem>>, vector<1x128xf32>
    %15 = vector.broadcast %14 : vector<1x128xf32> to vector<8x128xf32>
    %16 = arith.addf %13, %15 : vector<8x128xf32>
    %cst_13 = arith.constant 0.000000e+00 : f32
    %17 = vector.broadcast %cst_13 : f32 to vector<8x128xf32>
    %18 = arith.maximumf %16, %17 : vector<8x128xf32>
    %c0_14 = arith.constant 0 : index
    %c0_15 = arith.constant 0 : index
    %19 = vector.load %arg7[%c0_14, %c0_15] : memref<128x512xf32, #tpu.memory_space<vmem>>, vector<128x512xf32>
    %cst_16 = arith.constant dense<0.000000e+00> : vector<8x512xf32>
    %20 = tpu.matmul %18, %19, %cst_16 {dimension_numbers = #tpu.dot_dimension_numbers<[1], [0], [0], [1], [0, 0, 1, 1], [], []>} : vector<8x128xf32>, vector<128x512xf32>, vector<8x512xf32> -> vector<8x512xf32>
    %c0_17 = arith.constant 0 : index
    %c0_18 = arith.constant 0 : index
    %21 = vector.load %arg8[%c0_17, %c0_18] : memref<1x512xf32, #tpu.memory_space<vmem>>, vector<1x512xf32>
    %22 = vector.broadcast %21 : vector<1x512xf32> to vector<8x512xf32>
    %23 = arith.addf %20, %22 : vector<8x512xf32>
    %cst_19 = arith.constant 0.000000e+00 : f32
    %24 = vector.broadcast %cst_19 : f32 to vector<8x512xf32>
    %25 = arith.maximumf %23, %24 : vector<8x512xf32>
    %c0_20 = arith.constant 0 : index
    %c0_21 = arith.constant 0 : index
    %26 = vector.load %arg10[%c0_20, %c0_21] : memref<1x512xf32, #tpu.memory_space<vmem>>, vector<1x512xf32>
    %cst_22 = arith.constant dense<0.000000e+00> : vector<512xf32>
    %27 = vector.multi_reduction <add>, %25, %cst_22 [0] : vector<8x512xf32> to vector<512xf32>
    %28 = vector.shape_cast %27 : vector<512xf32> to vector<1x512xf32>
    %29 = arith.addf %26, %28 : vector<1x512xf32>
    %c0_23 = arith.constant 0 : index
    %c0_24 = arith.constant 0 : index
    %30 = vector.load %arg10[%c0_23, %c0_24] : memref<1x512xf32, #tpu.memory_space<vmem>>, vector<1x512xf32>
    tpu.vector_store %arg10[%c0_23, %c0_24], %29 {strides = array<i32>} : memref<1x512xf32, #tpu.memory_space<vmem>>, vector<1x512xf32>,
    %c1_i32 = arith.constant 1 : i32
    %31 = arith.cmpi eq, %arg1, %c1_i32 : i32
    %32 = arith.extui %31 : i1 to i32
    %c0_i32_25 = arith.constant 0 : i32
    %33 = arith.cmpi ne, %32, %c0_i32_25 : i32
    scf.if %33 {
      %c0_26 = arith.constant 0 : index
      %c0_27 = arith.constant 0 : index
      %34 = vector.load %arg10[%c0_26, %c0_27] : memref<1x512xf32, #tpu.memory_space<vmem>>, vector<1x512xf32>
      %c0_28 = arith.constant 0 : index
      %c0_29 = arith.constant 0 : index
      %c0_30 = arith.constant 0 : index
      %35 = vector.load %arg9[%c0_28, %c0_29, %c0_30] : memref<1x1x512xf32, #tpu.memory_space<vmem>>, vector<1x1x512xf32>
      %36 = vector.shape_cast %35 : vector<1x1x512xf32> to vector<1x512xf32>
      %37 = vector.shape_cast %34 : vector<1x512xf32> to vector<1x1x512xf32>
      tpu.vector_store %arg9[%c0_28, %c0_29, %c0_30], %37 {strides = array<i32>} : memref<1x1x512xf32, #tpu.memory_space<vmem>>, vector<1x1x512xf32>,
    } else {
    }
    return
  }
  func.func @transform_0(%arg0: i32, %arg1: i32) -> (i32, i32, i32) {
    %c0_i32 = arith.constant 0 : i32
    %c0_i32_0 = arith.constant 0 : i32
    return %arg0, %arg1, %c0_i32 : i32, i32, i32
  }
  func.func @transform_1(%arg0: i32, %arg1: i32) -> (i32, i32) {
    %c0_i32 = arith.constant 0 : i32
    %c0_i32_0 = arith.constant 0 : i32
    %c0_i32_1 = arith.constant 0 : i32
    return %c0_i32, %c0_i32_0 : i32, i32
  }
  func.func @transform_2(%arg0: i32, %arg1: i32) -> (i32, i32) {
    %c0_i32 = arith.constant 0 : i32
    %c0_i32_0 = arith.constant 0 : i32
    %c0_i32_1 = arith.constant 0 : i32
    return %c0_i32, %c0_i32_0 : i32, i32
  }
  func.func @transform_3(%arg0: i32, %arg1: i32) -> (i32, i32) {
    %c0_i32 = arith.constant 0 : i32
    %c0_i32_0 = arith.constant 0 : i32
    %c0_i32_1 = arith.constant 0 : i32
    return %c0_i32, %c0_i32_0 : i32, i32
  }
  func.func @transform_4(%arg0: i32, %arg1: i32) -> (i32, i32) {
    %c0_i32 = arith.constant 0 : i32
    %c0_i32_0 = arith.constant 0 : i32
    %c0_i32_1 = arith.constant 0 : i32
    return %c0_i32, %c0_i32_0 : i32, i32
  }
  func.func @transform_5(%arg0: i32, %arg1: i32) -> (i32, i32) {
    %c0_i32 = arith.constant 0 : i32
    %c0_i32_0 = arith.constant 0 : i32
    %c0_i32_1 = arith.constant 0 : i32
    return %c0_i32, %c0_i32_0 : i32, i32
  }
  func.func @transform_6(%arg0: i32, %arg1: i32) -> (i32, i32) {
    %c0_i32 = arith.constant 0 : i32
    %c0_i32_0 = arith.constant 0 : i32
    %c0_i32_1 = arith.constant 0 : i32
    return %c0_i32, %c0_i32_0 : i32, i32
  }
  func.func @transform_7(%arg0: i32, %arg1: i32) -> (i32, i32, i32) {
    %c0_i32 = arith.constant 0 : i32
    %c0_i32_0 = arith.constant 0 : i32
    %c0_i32_1 = arith.constant 0 : i32
    return %arg0, %c0_i32, %c0_i32_0 : i32, i32, i32
  }
}

</mosaic_0001>

<bundles_post_ra>
// kernel: tpu_custom_call.1
= control target key start
LH: loop header
LB: loop body
LE: loop exit
PB: predicated region body
PF: predicated region fallthrough
CT: control target
= control target key end

     0   :  { %12 = vsyncpa [#allocation4], 0  ;;  %s1603_s0 = inlined_call_operand.vmem [shape: f32[2,16,4], index: 0, kind: input, shape index: {}]   ;;  %s1604_s1 = inlined_call_operand.vmem [shape: f32[4,64], index: 1, kind: input, shape index: {}]   ;;  %s1605_s2 = inlined_call_operand.vmem [shape: f32[1,64], index: 2, kind: input, shape index: {}]   ;;  %s1606_s3 = inlined_call_operand.hbm [shape: f32[64,128], index: 3, kind: input, shape index: {}]   ;;  %s1607_s4 = inlined_call_operand.vmem [shape: f32[1,128], index: 4, kind: input, shape index: {}]   ;;  %s1608_s5 = inlined_call_operand.hbm [shape: f32[128,512], index: 5, kind: input, shape index: {}]   ;;  %s1609_s6 = inlined_call_operand.vmem [shape: f32[1,512], index: 6, kind: input, shape index: {}]   ;;  %s1610_s7 = inlined_call_operand.hbm [shape: f32[2,1,512], index: 7, kind: output, shape index: {}]  }
   0x1   :  { %13 = vsyncpa [#allocation7], 0 }
   0x2   :  { %14 = vsyncpa [#allocation5], 0 }
   0x3   :  { %16 = vsyncpa [#allocation5 + $0x1], 0  ;;  %s1377_s24 = smov 0   ;;  %s1379_s25 = smov 0  }
   0x4   :  { %s1381_s26 = smov 0   ;;  %s1383_s27 = smov 0  }
   0x5   :  { %s1385_s28 = smov 0   ;;  %s1387_s29 = smov 0  }
   0x6   :  { %s1389_s30 = smov 0   ;;  %s1391_s8 = smov 0  }
   0x7 LB: > { %1620 = sst [smem:[#allocation12_spill]] %s1303_s26  ;;  %s928_s9 = sadd.s32 4294967295, %s1323_s8   ;;  %s1323_s8 = sphi %s1391_s8, %s22_s8   ;;  %s1319_s30 = sphi %s1389_s30, %s1642_s30   ;;  %s1315_s29 = sphi %s1387_s29, %s1641_s29   ;;  %s1311_s28 = sphi %s1385_s28, %s1640_s28   ;;  %s1307_s27 = sphi %s1383_s27, %s1639_s27   ;;  %s1303_s26 = sphi %s1381_s26, %s1638_s26   ;;  %s1299_s25 = sphi %s1379_s25, %s1644_s25   ;;  %s1295_s24 = sphi %s1377_s24, %s1643_s24  }
   0x8   : > { %1621 = sst [smem:[#allocation13_spill]] %s1315_s29  ;;  %s929_s10 = sadd.s32 4294967294, %s1323_s8  }
   0x9   : > { %1622 = sst [smem:[#allocation14_spill]] %s1319_s30  ;;  %s31_s11 = sadd.s32 1, %s1315_s29 }
   0xa   : > { %s34_s12 = sadd.s32 1, %s1319_s30  ;;  %p32_p0 = scmp.ge.s32.totalorder %s31_s11, 2 }
   0xb   : > { %s195_s13 = sadd.s32 1, %s1303_s26  ;;  %p205_p1 = scmp.ne.s32.totalorder %s1303_s26, %s1299_s25 }
   0xc   : > { %p206_p2 = scmp.eq.s32.totalorder %s928_s9, 3  ;;  %s1646_s11 = smov (%p32_p0, %s31_s11), 0 }
   0xd   : > { %1623 = sst [smem:[#allocation15_spill]] %s1646_s11  ;;  %s1648_s12 = smov (!%p32_p0, %s34_s12), %s1319_s30 }
   0xe   : > { %p1427_p3 = por %p206_p2, %p205_p1  ;;  %p211_p4 = scmp.ne.s32.totalorder %s1299_s25, %s1295_s24 }
   0xf   : > { %p36_p5 = scmp.ge.s32.totalorder %s1648_s12, 2  ;;  %p212_p6 = scmp.eq.s32.totalorder %s929_s10, 3 }
  0x10   : > { %s1624_s14 = scalar_select %p1427_p3, 1, 0 }
  0x11   : > { %p930_p7 = scmp.ge.s32.totalorder %s1323_s8, 1  ;;  %p219_p8 = scmp.lt.s32.totalorder %s1323_s8, 5 }
  0x12   : > { %s1650_s12 = smov (%p36_p5, %s1648_s12), 0  ;;  %p1437_p9 = por %p212_p6, %p211_p4 }
  0x13   : > { %1625 = sst [smem:[#allocation16_spill]] %s1650_s12  ;;  %p1441_p10 = pnand %p930_p7, %p219_p8 }
  0x14   : > { %s1626_s15 = scalar_select %p1437_p9, 1, 0 }
  0x15   : > { %s1628_s16 = scalar_select %p1441_p10, 1, 0 }
  0x16   : > { %1627 = sst [smem:[#allocation17_spill]] %s1626_s15  ;;  %s192_s17 = ssub.s32 %s1319_s30, %s1650_s12 }
  0x17   : > { %p193_p11 = scmp.eq.s32.totalorder %s192_s17, 0  ;;  %p1074_p12 = pneg %p1441_p10 }
  0x18   : > { %p1449_p13 = scmp.eq.s32.totalorder %s928_s9, 0  ;;  %s1325_s20 = smov [#allocation3]  }
  0x19   : > { %s1454_s19 = scalar_select %p193_p11, %s1303_s26, %s195_s13  }
  0x1a   : > { %s1629_s18 = scalar_select %p1449_p13, 1, 0 }
  0x1b   : > { %1630 = sst [smem:[#allocation18_spill]] %s1454_s19  ;;  %s237_s21 = sshll.u32 %s1325_s20, 4  ;;  %s238_s21 = int_to_ptr.vmem [resolvable:$true] %s237_s21 }
  0x1c   : > { %p1458_p0 = pnand %p1449_p13, %p1074_p12  ;;  %s1165_s9 = scalar_lea.hbm %s1606_s3, 1024 }
  0x1d   : > { %p1166_p1 = scmp.ne.s32.totalorder %s1606_s3, %s1165_s9  ;;  %p1172_p6 = scmp.lt.u32.totalorder %s1165_s9, %s1606_s3 }
  0x1e   : > { %p1167_p2 = pneg %p1458_p0 }
  0x20   : > { %p1168_p4 = pnand %p1167_p2, %p1166_p1 }
  0x22   : > { %p1169_p5 = pneg %p1168_p4 }
  0x24   : > { %p1174_p7 = pnand %p1172_p6, %p1169_p5 }
  0x26   : > { %1177 = shalt.err (!%p1174_p7)
}
  0x27   : > { %s1178_s11 = scalar_lea.vmem %s238_s21, 1024  ;;  %p1186_p9 = scmp.lt.s32.totalorder %s238_s21, %s238_s21 }
  0x28   : > { %p1179_p8 = scmp.ne.s32.totalorder %s238_s21, %s1178_s11  ;;  %p1187_p3 = scmp.lt.s32.totalorder %s1178_s11, %s1178_s11 }
  0x2a   : > { %p1181_p11 = pnand %p1179_p8, %p1167_p2  ;;  %p1188_p13 = por %p1187_p3, %p1186_p9 }
  0x2c   : > { %p1182_p12 = pneg %p1181_p11 }
  0x2e   : > { %p1189_p10 = pnand %p1188_p13, %p1182_p12 }
  0x30   : > { %1192 = shalt.err (!%p1189_p10)
}
  0x31   : > { %s1326_s12 = smov 128   ;;  %s1327_s23 = smov 8  }
  0x32   : > { %1077 = dma.hbm_to_vmem [thread:$0]  (!%p1458_p0), %s1606_s3, 1024, %s238_s21, [#allocation4], %s1326_s12, %s1326_s12, %s1327_s23  }
  0x33   : > { %s1328_s17 = smov [#allocation6]   ;;  %s1193_s29 = scalar_lea.hbm %s1608_s5, 8192 }
  0x34   : > { %s253_s13 = sshll.u32 %s1328_s17, 4  ;;  %p1194_p3 = scmp.ne.s32.totalorder %s1608_s5, %s1193_s29  ;;  %s254_s13 = int_to_ptr.vmem [resolvable:$true] %s253_s13 }
  0x35   : > { %p1200_p13 = scmp.lt.u32.totalorder %s1193_s29, %s1608_s5 }
  0x36   : > { %p1196_p9 = pnand %p1194_p3, %p1167_p2 }
  0x38   : > { %p1197_p10 = pneg %p1196_p9 }
  0x3a   : > { %p1202_p1 = pnand %p1200_p13, %p1197_p10 }
  0x3c   : > { %1205 = shalt.err (!%p1202_p1)
}
  0x3d   : > { %s1206_s21 = scalar_lea.vmem %s254_s13, 8192  ;;  %p1214_p7 = scmp.lt.s32.totalorder %s254_s13, %s254_s13 }
  0x3e   : > { %p1207_p4 = scmp.ne.s32.totalorder %s254_s13, %s1206_s21  ;;  %p1215_p8 = scmp.lt.s32.totalorder %s1206_s21, %s1206_s21 }
  0x40   : > { %p1209_p5 = pnand %p1207_p4, %p1167_p2  ;;  %p1216_p11 = por %p1215_p8, %p1214_p7 }
  0x42   : > { %p1210_p6 = pneg %p1209_p5 }
  0x44   : > { %p1217_p12 = pnand %p1216_p11, %p1210_p6 }
  0x46   : > { %1220 = shalt.err (!%p1217_p12)
}
  0x47   : > { %s1329_s30 = smov 512   ;;  %s1330_s19 = smov 32  }
  0x48   : > { %1080 = dma.hbm_to_vmem [thread:$0]  (!%p1458_p0), %s1608_s5, 8192, %s254_s13, [#allocation7], %s1329_s30, %s1329_s30, %s1330_s19  }
  0x49   : > { %p1632_p3 = scmp.ne.s32.totalorder %s1628_s16, 0 }
  0x4a   : > { %p1633_p9 = scmp.ne.s32.totalorder (!%p1632_p3), %s1629_s18, 0 }
  0x4b   : > { %283 = sbr.rel (%p1632_p3) target bundleno = 807 (0x327), region = 48 }
  0x52   : > { %1282 = dma.done.wait (%p1633_p9), [#allocation4], 1024  }
  0x53   : > { %1284 = vsyncadd (%p1633_p9), [#allocation4], 4294966272 }
  0x54   : > { %1286 = dma.done.wait (%p1633_p9), [#allocation7], 8192  }
  0x55   : > { %1288 = vsyncadd (%p1633_p9), [#allocation7], 4294959104  ;;  %s319_s15 = sand.u32 1, %s1299_s25   ;;  %p322_p0 = scmp.lt.s32.totalorder %s1311_s28, 1 }
  0x56   : > { %s1518_s16 = sshll.u32 %s319_s15, 2  ;;  %p324_p2 = scmp.lt.s32.totalorder %s1307_s27, 1 }
  0x57   : > { %s323_s22 = scalar_select %p322_p0, %s1311_s28, 1 }
  0x58   : > { %s325_s12 = scalar_select %p324_p2, %s1307_s27, 1 }
  0x59   : > { %s938_s23 = sshll.u32 %s323_s22, 1  ;;  %s321_s20 = scalar_lea.vmem [#allocation8], %s1518_s16 }
  0x5a   : > { %s327_s10 = sadd.s32 %s938_s23, %s325_s12  ;;  %p940_p10 = scmp.ne.s32.totalorder %s1307_s27, 0 }
  0x5b   : > { %s939_s9 = sshll.u32 %s327_s10, 3  ;;  %v334_v0 = vlaneseq (!%p940_p10)  ;;  %v1331_v1 = vmov (!%p940_p10), 0.0  }
  0x5c   : > { %s329_s13 = scalar_lea.vmem %s1603_s0, %s939_s9  ;;  %333 = sbr.rel (%p940_p10) target bundleno = 99 (0x63), region = 60 }
  0x5d   : > { %vm336_vm0 = vcmp.lt.s32.totalorder (!%p940_p10), %v334_v0, 512 }
  0x5e   : > { %338 = vst.msk [vmem:[#allocation2] sm:$0xf] (!%p940_p10), %vm336_vm0, %v1331_v1 }
  0x63 PF: > { %v340_v2 = vld [vmem:[%s1604_s1] sm:$0xf]  ;;  %vm352_vm1 = vcmask 1043456   ;;  %v1332_v4 = vmov 0.0   ;;  %vm1333_vm2 = vmmov 0   ;;  %vm348_vm3 = vcmask 31744  }
  0x64   : > { %v339_v3 = vld [vmem:[%s329_s13] sm:$0xff]  ;;  %964 = vmatprep.subr.mxu0 %v1332_v4  ;;  %966 = vmatprep.mubr.msk.f32.mxu0 %vm1333_vm2, %v1332_v4  ;;  %v428_v6 = vld [vmem:[#allocation3 + $0x8] sm:$0xff]  ;;  %v429_v7 = vld [vmem:[#allocation3 + $0x10] sm:$0xff]  ;;  %v1334_v8 = vmov 0.0|0.0   ;;  %vm442_vm4 = vcmask 523264   ;;  %p946_p13 = scmp.ne.s32.totalorder %s1307_s27, 1 }
  0x65   : > { %v427_v5 = vld [vmem:[#allocation3] sm:$0xff]  ;;  %965 = vmatpush3.msk.msra.mxu0 %vm352_vm1, %v340_v2  ;;  %988 = vmatprep.subr.bf16.mxu1 %v1334_v8  ;;  %v430_v10 = vld [vmem:[#allocation3 + $0x18] sm:$0xff]  ;;  %v432_v13 = vld [vmem:[#allocation3 + $0x28] sm:$0xff] }
  0x66   : > { %v989_v9 = vpack.c.bf16 %v428_v6, %v427_v5  ;;  %967 = vmatmul.mubr.msk.f32.vlgmr.msra.gmra.mrb[0].mxu0 %vm348_vm3, %v339_v3  ;;  %985 = vmatprep.mubr.msk.f32.mxu1 %vm1333_vm2, %v1332_v4  ;;  %v992_v11 = vpack.c.bf16 %v430_v10, %v429_v7  ;;  %v431_v12 = vld [vmem:[#allocation3 + $0x20] sm:$0xff]  ;;  %v433_v15 = vld [vmem:[#allocation3 + $0x30] sm:$0xff]  ;;  %v434_v16 = vld [vmem:[#allocation3 + $0x38] sm:$0xff] }
  0x67   : > { %667 = vmatprep.mubr.f32.mxu0 %v1332_v4  ;;  %v995_v14 = vpack.c.bf16 %v432_v13, %v431_v12  ;;  %v998_v17 = vpack.c.bf16 %v434_v16, %v433_v15  ;;  %v518_v18 = vld [vmem:[#allocation6 + $0x8] sm:$0xff]  ;;  %v520_v20 = vld [vmem:[#allocation6 + $0x18] sm:$0xff]  ;;  %v517_v23 = vld [vmem:[#allocation6] sm:$0xff] }
  0x68   : > { %990 = vmatpush3.bf16.msra.mxu1 %v989_v9  ;;  %v522_v19 = vld [vmem:[#allocation6 + $0x28] sm:$0xff]  ;;  %v524_v22 = vld [vmem:[#allocation6 + $0x38] sm:$0xff]  ;;  %v521_v24 = vld [vmem:[#allocation6 + $0x20] sm:$0xff] }
  0x69   : > { %991 = vmatprep.subr.bf16.mxu1 %v1334_v8  ;;  %v1000_v21 = vpack.c.bf16 %v522_v19, %v518_v18  ;;  %v1032_v25 = vpack.c.bf16 %v524_v22, %v520_v20  ;;  %v1002_v26 = vpack.c.bf16 %v521_v24, %v517_v23  ;;  %v526_v27 = vld [vmem:[#allocation6 + $0x48] sm:$0xff]  ;;  %v525_v30 = vld [vmem:[#allocation6 + $0x40] sm:$0xff]  ;;  %v941_v63 = vld [vmem:[%s1605_s2] ss:$0 sm:$0xff] }
  0x6a   : > { %v530_v28 = vld [vmem:[#allocation6 + $0x68] sm:$0xff]  ;;  %v529_v31 = vld [vmem:[#allocation6 + $0x60] sm:$0xff]  ;;  %v519_v0 = vld [vmem:[#allocation6 + $0x10] sm:$0xff] }
  0x6b   : > { %1001 = vmatprep.subr.bf16.mxu0 %v1000_v21  ;;  %v1004_v29 = vpack.c.bf16 %v530_v28, %v526_v27  ;;  %v1006_v32 = vpack.c.bf16 %v529_v31, %v525_v30  ;;  %v534_v33 = vld [vmem:[#allocation6 + $0x88] sm:$0xff]  ;;  %v533_v36 = vld [vmem:[#allocation6 + $0x80] sm:$0xff]  ;;  %v523_v1 = vld [vmem:[#allocation6 + $0x30] sm:$0xff] }
  0x6c   : > { %993 = vmatpush3.bf16.msra.mxu1 %v992_v11  ;;  %1003 = vmatpush1.bf16.msra.mxu0 %v1002_v26  ;;  %v538_v34 = vld [vmem:[#allocation6 + $0xa8] sm:$0xff]  ;;  %v537_v37 = vld [vmem:[#allocation6 + $0xa0] sm:$0xff]  ;;  %v528_v3 = vld [vmem:[#allocation6 + $0x58] sm:$0xff] }
  0x6d   : > { %994 = vmatprep.subr.bf16.mxu1 %v1334_v8  ;;  %1005 = vmatprep.subr.bf16.mxu0 %v1004_v29  ;;  %v1008_v35 = vpack.c.bf16 %v538_v34, %v534_v33  ;;  %v1010_v38 = vpack.c.bf16 %v537_v37, %v533_v36  ;;  %v542_v39 = vld [vmem:[#allocation6 + $0xc8] sm:$0xff]  ;;  %v541_v42 = vld [vmem:[#allocation6 + $0xc0] sm:$0xff]  ;;  %v532_v5 = vld [vmem:[#allocation6 + $0x78] sm:$0xff] }
  0x6e   : > { %v546_v40 = vld [vmem:[#allocation6 + $0xe8] sm:$0xff]  ;;  %v545_v43 = vld [vmem:[#allocation6 + $0xe0] sm:$0xff]  ;;  %v1036_v10 = vpack.c.bf16 %v532_v5, %v528_v3  ;;  %v527_v11 = vld [vmem:[#allocation6 + $0x50] sm:$0xff] }
  0x6f   : > { %v1012_v41 = vpack.c.bf16 %v546_v40, %v542_v39  ;;  %v1014_v44 = vpack.c.bf16 %v545_v43, %v541_v42  ;;  %v550_v45 = vld [vmem:[#allocation6 + $0x108] sm:$0xff]  ;;  %v549_v48 = vld [vmem:[#allocation6 + $0x100] sm:$0xff]  ;;  %v531_v12 = vld [vmem:[#allocation6 + $0x70] sm:$0xff] }
  0x70   : > { %996 = vmatpush3.bf16.msra.mxu1 %v995_v14  ;;  %1007 = vmatpush1.bf16.msra.mxu0 %v1006_v32  ;;  %v554_v46 = vld [vmem:[#allocation6 + $0x128] sm:$0xff]  ;;  %v553_v49 = vld [vmem:[#allocation6 + $0x120] sm:$0xff]  ;;  %v536_v13 = vld [vmem:[#allocation6 + $0x98] sm:$0xff]  ;;  %v1038_v15 = vpack.c.bf16 %v531_v12, %v527_v11 }
  0x71   : > { %997 = vmatprep.subr.bf16.mxu1 %v1334_v8  ;;  %1009 = vmatprep.subr.bf16.mxu0 %v1008_v35  ;;  %v1016_v47 = vpack.c.bf16 %v554_v46, %v550_v45  ;;  %v1018_v50 = vpack.c.bf16 %v553_v49, %v549_v48  ;;  %v558_v51 = vld [vmem:[#allocation6 + $0x148] sm:$0xff]  ;;  %v557_v54 = vld [vmem:[#allocation6 + $0x140] sm:$0xff]  ;;  %v1034_v8 = vpack.c.bf16 %v523_v1, %v519_v0  ;;  %v540_v14 = vld [vmem:[#allocation6 + $0xb8] sm:$0xff] }
  0x72   : > { %v562_v52 = vld [vmem:[#allocation6 + $0x168] sm:$0xff]  ;;  %v561_v55 = vld [vmem:[#allocation6 + $0x160] sm:$0xff]  ;;  %v1040_v16 = vpack.c.bf16 %v540_v14, %v536_v13  ;;  %v539_v18 = vld [vmem:[#allocation6 + $0xb0] sm:$0xff] }
  0x73   : > { %v1020_v53 = vpack.c.bf16 %v562_v52, %v558_v51  ;;  %v1022_v56 = vpack.c.bf16 %v561_v55, %v557_v54  ;;  %v566_v57 = vld [vmem:[#allocation6 + $0x188] sm:$0xff]  ;;  %v565_v60 = vld [vmem:[#allocation6 + $0x180] sm:$0xff]  ;;  %v544_v19 = vld [vmem:[#allocation6 + $0xd8] sm:$0xff] }
  0x74   : > { %999 = vmatpush3.bf16.msra.mxu1 %v998_v17  ;;  %1011 = vmatpush1.bf16.msra.mxu0 %v1010_v38  ;;  %v570_v58 = vld [vmem:[#allocation6 + $0x1a8] sm:$0xff]  ;;  %v569_v61 = vld [vmem:[#allocation6 + $0x1a0] sm:$0xff]  ;;  %v535_v17 = vld [vmem:[#allocation6 + $0x90] sm:$0xff] }
  0x75   : > { %1033 = vmatprep.subr.bf16.mxu1 %v1032_v25  ;;  %1013 = vmatprep.subr.bf16.mxu0 %v1012_v41  ;;  %v1024_v59 = vpack.c.bf16 %v570_v58, %v566_v57  ;;  %v1026_v62 = vpack.c.bf16 %v569_v61, %v565_v60  ;;  %v548_v20 = vld [vmem:[#allocation6 + $0xf8] sm:$0xff]  ;;  %v1042_v21 = vpack.c.bf16 %v539_v18, %v535_v17  ;;  %v543_v23 = vld [vmem:[#allocation6 + $0xd0] sm:$0xff]  ;;  %v574_v43 = vld [vmem:[#allocation6 + $0x1c8] sm:$0xff]  ;;  %v583_v60 = vlaneseq }
  0x76   : > { %v1044_v22 = vpack.c.bf16 %v548_v20, %v544_v19  ;;  %v547_v24 = vld [vmem:[#allocation6 + $0xf0] sm:$0xff]  ;;  %v552_v25 = vld [vmem:[#allocation6 + $0x118] sm:$0xff]  ;;  %v573_v48 = vld [vmem:[#allocation6 + $0x1c0] sm:$0xff] }
  0x77   : > { %v556_v26 = vld [vmem:[#allocation6 + $0x138] sm:$0xff]  ;;  %v1046_v27 = vpack.c.bf16 %v547_v24, %v543_v23  ;;  %v551_v29 = vld [vmem:[#allocation6 + $0x110] sm:$0xff]  ;;  %v577_v49 = vld [vmem:[#allocation6 + $0x1e0] sm:$0xff]  ;;  %v584_v61 = vshrl.u32 %v583_v60, 7  ;;  %vm806_vm5 = vcmp.lt.s32.totalorder %v583_v60, 512 }
  0x78   : > { %1015 = vmatpush1.bf16.msra.mxu0 %v1014_v44  ;;  %v1048_v28 = vpack.c.bf16 %v556_v26, %v552_v25  ;;  %v560_v30 = vld [vmem:[#allocation6 + $0x158] sm:$0xff]  ;;  %v559_v34 = vld [vmem:[#allocation6 + $0x150] sm:$0xff]  ;;  %v578_v44 = vld [vmem:[#allocation6 + $0x1e8] sm:$0xff]  ;;  %v1030_v51 = vpack.c.bf16 %v577_v49, %v573_v48 }
  0x79   : > { %1017 = vmatprep.subr.bf16.mxu0 %v1016_v47  ;;  %v564_v31 = vld [vmem:[#allocation6 + $0x178] sm:$0xff]  ;;  %v563_v35 = vld [vmem:[#allocation6 + $0x170] sm:$0xff]  ;;  %v1028_v46 = vpack.c.bf16 %v578_v44, %v574_v43  ;;  %v589_v1 = vsub.s32 1, %v584_v61 }
  0x7a   : > { %v1052_v33 = vpack.c.bf16 %v564_v31, %v560_v30  ;;  %v568_v36 = vld [vmem:[#allocation6 + $0x198] sm:$0xff]  ;;  %v1054_v38 = vpack.c.bf16 %v563_v35, %v559_v34  ;;  %v567_v40 = vld [vmem:[#allocation6 + $0x190] sm:$0xff] }
  0x7b   : > { %v572_v37 = vld [vmem:[#allocation6 + $0x1b8] sm:$0xff]  ;;  %v571_v41 = vld [vmem:[#allocation6 + $0x1b0] sm:$0xff] }
  0x7c   : > { %1019 = vmatpush1.bf16.msra.mxu0 %v1018_v50  ;;  %v1056_v39 = vpack.c.bf16 %v572_v37, %v568_v36  ;;  %v1058_v42 = vpack.c.bf16 %v571_v41, %v567_v40  ;;  %v576_v45 = vld [vmem:[#allocation6 + $0x1d8] sm:$0xff]  ;;  %v575_v52 = vld [vmem:[#allocation6 + $0x1d0] sm:$0xff] }
  0x7d   : > { %1021 = vmatprep.subr.bf16.mxu0 %v1020_v53  ;;  %v580_v47 = vld [vmem:[#allocation6 + $0x1f8] sm:$0xff]  ;;  %v579_v53 = vld [vmem:[#allocation6 + $0x1f0] sm:$0xff] }
  0x7e   : > { %v1060_v50 = vpack.c.bf16 %v580_v47, %v576_v45  ;;  %v1062_v54 = vpack.c.bf16 %v579_v53, %v575_v52  ;;  %v944_v55 = vld [vmem:[%s1607_s4] ss:$0 sm:$0xff] }
  0x7f   : > { %v581_v0 = vld [vmem:[%s1609_s6] sm:$0xf] }
  0x80   : > { %1023 = vmatpush1.bf16.msra.mxu0 %v1022_v56  ;;  %v749_v52 = vld [vmem:[#allocation2] sm:$0xf] }
  0x81   : > { %1025 = vmatprep.subr.bf16.mxu0 %v1024_v59 }
  0x84   : > { %1027 = vmatpush1.bf16.msra.mxu0 %v1026_v62  ;;  %v585_v62 = vsub.s32 0, %v584_v61 }
  0x85   : > { %1029 = vmatprep.subr.bf16.mxu0 %v1028_v46 }
  0x86   : > { %v586_v3 = vrot.slane %v581_v0, %v585_v62 }
  0x88   : > { %1031 = vmatpush1.bf16.msra.mxu0 %v1030_v51 }
 0x139   : > { %v422_v2 = vpop.f32.mrb[0].mxu0 }
 0x13a   : > { %v423_v6 = vadd.f32 %v941_v63, %v422_v2  ;;  %v968_v7 = vpop.f32.mrb[1].mxu0  ;;  %v593_v63 = vsub.s32 2, %v584_v61  ;;  %v597_v2 = vsub.s32 3, %v584_v61 }
 0x13c   : > { %v426_v9 = vmax.f32 %v423_v6, 0.0  ;;  %v594_v5 = vrot.slane %v581_v0, %v593_v63  ;;  %v590_v6 = vrot.slane %v581_v0, %v589_v1  ;;  %v598_v7 = vrot.slane %v581_v0, %v597_v2 }
 0x13e   : > { %986 = vmatmul.mubr.msk.f32.vlgmr.msra.gmra.mrb[0].mxu1 %vm442_vm4, %v426_v9 }
 0x13f   : > { %1035 = vmatpush1.bf16.msra.mxu1 %v1034_v8  ;;  %738 = vmatprep.mubr.f32.mxu1 %v1332_v4  ;;  %v555_v4 = vld [vmem:[#allocation6 + $0x130] sm:$0xff] }
 0x140   : > { %1037 = vmatprep.subr.bf16.mxu1 %v1036_v10  ;;  %v1050_v32 = vpack.c.bf16 %v555_v4, %v551_v29 }
 0x143   : > { %1039 = vmatpush1.bf16.msra.mxu1 %v1038_v15 }
 0x144   : > { %1041 = vmatprep.subr.bf16.mxu1 %v1040_v16 }
 0x147   : > { %1043 = vmatpush1.bf16.msra.mxu1 %v1042_v21 }
 0x148   : > { %1045 = vmatprep.subr.bf16.mxu1 %v1044_v22 }
 0x14b   : > { %1047 = vmatpush1.bf16.msra.mxu1 %v1046_v27  ;;  %v1335_v27 = vmov 1966171168  }
 0x14c   : > { %1049 = vmatprep.subr.bf16.mxu1 %v1048_v28  ;;  %v781_v28 = vunpack.c.l.s4 %v1335_v27 }
 0x14e   : > { %v782_v36 = vunpack.c.0.s8 %v781_v28 }
 0x14f   : > { %1051 = vmatpush1.bf16.msra.mxu1 %v1050_v32 }
 0x150   : > { %1053 = vmatprep.subr.bf16.mxu1 %v1052_v33  ;;  %v785_v45 = vsub.s32 %v782_v36, %v584_v61 }
 0x153   : > { %1055 = vmatpush1.bf16.msra.mxu1 %v1054_v38 }
 0x154   : > { %1057 = vmatprep.subr.bf16.mxu1 %v1056_v39 }
 0x157   : > { %1059 = vmatpush1.bf16.msra.mxu1 %v1058_v42 }
 0x158   : > { %1061 = vmatprep.subr.bf16.mxu1 %v1060_v50 }
 0x15b   : > { %1063 = vmatpush1.bf16.msra.mxu1 %v1062_v54 }
 0x211   : > { %v512_v56 = vpop.f32.mrb[0].mxu1 }
 0x212   : > { %v513_v57 = vadd.f32 %v944_v55, %v512_v56  ;;  %v987_v58 = vpop.f32.mrb[1].mxu1 }
 0x214   : > { %v516_v59 = vmax.f32 %v513_v57, 0.0 }
 0x216   : > { %668 = vmatmul.mubr.f32.vlgmr.msra.gmra.mrb[2].mxu0 %v516_v59  ;;  %739 = vmatmul.mubr.f32.vlgmr.msra.gmra.mrb[2].mxu1 %v516_v59 }
 0x2e9   : > { %v669_v8 = vpop.f32.mrb[2].mxu0  ;;  %v740_v9 = vpop.f32.mrb[2].mxu1 }
 0x2ea   : > { %v670_v10 = vadd.f32 %v669_v8, %v586_v3  ;;  %v741_v11 = vadd.f32 %v740_v9, %v594_v5  ;;  %v671_v12 = vpop.f32.mrb[3].mxu0  ;;  %v742_v13 = vpop.f32.mrb[3].mxu1 }
 0x2eb   : > { %v672_v14 = vadd.f32 %v671_v12, %v590_v6  ;;  %v743_v15 = vadd.f32 %v742_v13, %v598_v7 }
 0x2ec   : > { %v745_v16 = vmax.f32 %v670_v10, 0.0  ;;  %v747_v17 = vmax.f32 %v741_v11, 0.0 }
 0x2ed   : > { %v746_v18 = vmax.f32 %v672_v14, 0.0  ;;  %v748_v19 = vmax.f32 %v743_v15, 0.0 }
 0x2ee   : > { %v750_v20 = vrot.slane %v745_v16, 4  ;;  %v762_v21 = vrot.slane %v747_v17, 4 }
 0x2ef   : > { %v756_v22 = vrot.slane %v746_v18, 4  ;;  %v768_v23 = vrot.slane %v748_v19, 4 }
 0x2f0   : > { %v751_v24 = vadd.f32 %v750_v20, %v745_v16  ;;  %v763_v25 = vadd.f32 %v762_v21, %v747_v17 }
 0x2f1   : > { %v757_v26 = vadd.f32 %v756_v22, %v746_v18  ;;  %v769_v29 = vadd.f32 %v768_v23, %v748_v19 }
 0x2f2   : > { %v752_v4 = vrot.slane %v751_v24, 2  ;;  %v764_v30 = vrot.slane %v763_v25, 2 }
 0x2f3   : > { %v758_v31 = vrot.slane %v757_v26, 2  ;;  %v770_v32 = vrot.slane %v769_v29, 2 }
 0x2f4   : > { %v753_v33 = vadd.f32 %v752_v4, %v751_v24  ;;  %v765_v34 = vadd.f32 %v764_v30, %v763_v25 }
 0x2f5   : > { %v759_v35 = vadd.f32 %v758_v31, %v757_v26  ;;  %v771_v37 = vadd.f32 %v770_v32, %v769_v29 }
 0x2f6   : > { %v754_v38 = vrot.slane %v753_v33, 1  ;;  %v766_v39 = vrot.slane %v765_v34, 1 }
 0x2f7   : > { %v760_v40 = vrot.slane %v759_v35, 1  ;;  %v772_v41 = vrot.slane %v771_v37, 1 }
 0x2f8   : > { %v755_v42 = vadd.f32 %v754_v38, %v753_v33  ;;  %v767_v43 = vadd.f32 %v766_v39, %v765_v34 }
 0x2f9   : > { %v761_v44 = vadd.f32 %v760_v40, %v759_v35  ;;  %v773_v46 = vadd.f32 %v772_v41, %v771_v37 }
 0x2fb   : > { %v778_v47 = vcombine.low %v755_v42, %v761_v44  ;;  %v779_v48 = vcombine.low %v767_v43, %v773_v46 }
 0x2fd   : > { %v786_v49 = vrot.slane %v778_v47, %v785_v45  ;;  %v793_v50 = vrot.slane %v779_v48, %v785_v45 }
 0x2ff   : > { %v794_v51 = vcombine.low %v786_v49, %v793_v50  ;;  %812 = sbr.rel (%p946_p13) target bundleno = 782 (0x30e), region = 64 }
 0x301   : > { %v801_v53 = vrot.slane %v794_v51, %v785_v45 }
 0x303   : > { %v803_v54 = vadd.f32 %v801_v53, %v749_v52 }
 0x305   : > { %808 = vst.msk [vmem:[#allocation2] sm:$0xf] %vm806_vm5, %v803_v54 }
 0x30c   : > { %v813_v55 = vld [vmem:[#allocation2] sm:$0xf] }
 0x30d   : > { %814 = vst.msk [vmem:[%s321_s20] sm:$0xf] %vm806_vm5, %v813_v55 }
 0x30e PF: > { %s952_s23 = sshll.u32 %s1311_s28, 6  ;;  %s830_s17 = sshll.u32 %s321_s20, 4  ;;  %s831_s17 = int_to_ptr.vmem [resolvable:$true] %s830_s17 }
 0x30f   : > { %s1552_s18 = scalar_lea.hbm %s1610_s7, %s952_s23  ;;  %s816_s27 = scalar_lea.sflag [#allocation5], %s319_s15 }
 0x310   : > { %s1221_s13 = scalar_lea.vmem %s831_s17, 64  ;;  %p1634_p4 = scmp.ne.s32.totalorder %s1624_s14, 0 }
 0x311   : > { %p1222_p1 = scmp.ne.s32.totalorder %s831_s17, %s1221_s13  ;;  %s1336_s11 = smov [#allocation8]  }
 0x312   : > { %s1225_s21 = sshll.u32 %s1336_s11, 4  ;;  %s1226_s21 = int_to_ptr.vmem [resolvable:$false] %s1225_s21 }
 0x313   : > { %p1223_p5 = pnand %p1222_p1, %p1634_p4  ;;  %s1227_s30 = scalar_lea.vmem %s1226_s21, 128 }
 0x314   : > { %p1228_p7 = scmp.lt.s32.totalorder %s831_s17, %s1226_s21  ;;  %p1229_p8 = scmp.lt.s32.totalorder %s1227_s30, %s1221_s13 }
 0x315   : > { %p1224_p6 = pneg %p1223_p5 }
 0x316   : > { %p1230_p11 = por %p1229_p8, %p1228_p7 }
 0x318   : > { %p1231_p12 = pnand %p1230_p11, %p1224_p6 }
 0x31a   : > { %1234 = shalt.err (!%p1231_p12)
}
 0x31b   : > { %s1235_s28 = scalar_lea.hbm %s1552_s18, 64  ;;  %s1239_s20 = scalar_lea.hbm %s1610_s7, 128 }
 0x31c   : > { %p1236_p3 = scmp.ne.s32.totalorder %s1552_s18, %s1235_s28  ;;  %p1240_p2 = scmp.lt.u32.totalorder %s1552_s18, %s1610_s7 }
 0x31d   : > { %p1241_p10 = scmp.lt.u32.totalorder %s1239_s20, %s1235_s28  ;;  %p1243_p1 = scmp.lt.u32.totalorder %s1235_s28, %s1552_s18 }
 0x31e   : > { %p1237_p9 = pnand %p1236_p3, %p1634_p4 }
 0x31f   : > { %p1242_p13 = por %p1241_p10, %p1240_p2 }
 0x320   : > { %p1238_p0 = pneg %p1237_p9 }
 0x321   : > { %p1244_p5 = por %p1243_p1, %p1242_p13 }
 0x323   : > { %p1245_p6 = pnand %p1244_p5, %p1238_p0 }
 0x325   : > { %1248 = shalt.err (!%p1245_p6)
}
 0x326   : > { %1072 = dma.vmem_to_hbm [thread:$0]  (%p1634_p4), %s831_s17, 64, %s1552_s18, %s816_s27  }
 0x327 PF: > { %s1635_s29 = sld [smem:[#allocation17_spill]]  ;;  %p1089_p7 = scmp.ge.s32.totalorder %s1323_s8, 2 }
 0x328   : > { %s842_s22 = sand.u32 1, %s1295_s24  }
 0x329   : > { %s843_s12 = scalar_lea.sflag [#allocation5], %s842_s22 }
 0x32d   : > { %p1636_p8 = scmp.ne.s32.totalorder %s1635_s29, 0 }
 0x32f   : > { %p1082_p11 = pnand %p1089_p7, %p1636_p8 }
 0x331   : > { %1290 = dma.done.wait (!%p1082_p11), %s843_s12, 64  }
 0x332   : > { %1292 = vsyncadd (!%p1082_p11), %s843_s12, 4294967232  ;;  %s22_s8 = sadd.s32 1, %s1323_s8   ;;  %s1637_s23 = sld [smem:[#allocation12_spill]] }
 0x333   : > { %p19_p12 = scmp.ge.s32.totalorder %s22_s8, 6   ;;  %s1638_s26 = sld [smem:[#allocation18_spill]] }
 0x334   : > { %s1639_s27 = sld [smem:[#allocation13_spill]]  ;;  %s1640_s28 = sld [smem:[#allocation14_spill]] }
 0x335   : > { %s1641_s29 = sld [smem:[#allocation15_spill]]  ;;  %s1642_s30 = sld [smem:[#allocation16_spill]] }
 0x336   : > { %s1643_s24 = smov %s1299_s25  ;;  %21 = sbr.rel (!%p19_p12) target bundleno = 7 (0x7), region = 100 }
 0x338   : > { %s1644_s25 = smov %s1637_s23 }
 0x33d   :  { %848 = vsyncpa [#allocation4], 1 }
 0x33e   :  { %850 = vsyncpa [#allocation4 + $0x1], 1 }
 0x33f   :  { %851 = vsyncpa [#allocation7], 1 }
 0x340   :  { %852 = vsyncpa [#allocation5], 1 }
 0x341   :  { %854 = vsyncpa [#allocation5 + $0x1], 1 }

</bundles_post_ra>
